<compile_context>
chip_gen: v5e
topology: v5e:2x2
jax: 0.10.0
libtpu: 0.0.40
codegen_flags: <defaults>
</compile_context>

<pallas_src>
import jax
import jax.numpy as jnp
from jax.experimental import pallas as pl
from jax.experimental.pallas import tpu as pltpu

EPS = 1e-4


def _mbn_fwd_kernel(x_ref, ss_ref, y_ref):
    """y = x * scale + shift, scale/shift precomputed per (packed) channel.

    x_ref:  (row_tile, Cf)
    ss_ref: (2, Cf) float32 — row 0 = scale, row 1 = shift
    y_ref:  (row_tile, Cf)
    """
    scale = ss_ref[0:1, :]                      # (1, Cf), broadcast over rows
    shift = ss_ref[1:2, :]                      # (1, Cf)
    y = x_ref[...].astype(jnp.float32) * scale + shift
    y_ref[...] = y.astype(y_ref.dtype)


def _round_up(a, b):
    return ((a + b - 1) // b) * b


def moving_batch_norm_forward(x, logpx, running_mean, running_var,
                              weight=None, bias=None, *, eps=EPS,
                              affine=True, row_tile=None,
                              tile_budget_bytes=16 << 20,
                              vmem_limit_bytes=64 << 20):
    """Eval-mode forward of MovingBatchNormNd (channels-last, 2-D input).

    Returns y if logpx is None, else (y, log_out) like the PyTorch module.
    """
    N, C = x.shape
    itemsize = jnp.dtype(x.dtype).itemsize

    # ---- O(C) per-channel constants, hoisted out of the streaming kernel ----
    mean32 = running_mean.astype(jnp.float32)
    var32 = running_var.astype(jnp.float32)
    neg_half_logvar = -0.5 * jnp.log(var32 + eps)
    inv_std = jnp.exp(neg_half_logvar)          # == (var + eps) ** -0.5
    ldg = neg_half_logvar                       # per-channel logdetgrad
    if affine:
        w32 = weight.astype(jnp.float32)
        b32 = bias.astype(jnp.float32)
        scale = jnp.exp(w32) * inv_std
        shift = b32 - mean32 * scale
        ldg = ldg + w32
    else:
        scale = inv_std
        shift = -mean32 * scale
    ldg_sum = jnp.sum(ldg)                      # scalar, data independent

    # ---- lane-dense packing: fold `pack` rows into one kernel row ----------
    # Row-major reshape (N, C) -> (N/pack, pack*C) is a no-copy view; the
    # per-channel params are tiled to match.  pack*C >= 128 => full-width vst.
    pack = max(1, -(-128 // C))                 # ceil(128 / C)
    Cf = pack * C
    scale_shift = jnp.stack(
        [jnp.tile(scale, pack), jnp.tile(shift, pack)], axis=0)   # (2, Cf) f32

    # ---- choose the row tile (in packed rows) from dtype / VMEM budget -----
    # Min sublane granularity per dtype (f32: 8, bf16: 16, int8/fp8: 32).
    sub = {4: 8, 2: 16, 1: 32}.get(itemsize, 8)
    R = -(-N // pack)                           # packed-row count needed
    r_cap = _round_up(R, sub)
    if row_tile is None:
        # x and y are double-buffered: ~4 * rt * Cf * itemsize of VMEM.
        rt = tile_budget_bytes // max(1, 4 * Cf * itemsize)
        rt = max(sub, (rt // sub) * sub)
    else:
        rt = max(sub, (row_tile // sub) * sub)
    rt = min(rt, r_cap)
    # Keep at least 2 grid steps when there are enough rows (megacore / v7x).
    if rt >= r_cap and R > sub:
        rt = max(sub, _round_up(-(-R // 2), sub))

    r_pad = _round_up(R, rt)
    n_pad = r_pad * pack
    x_in = jnp.pad(x, ((0, n_pad - N), (0, 0))) if n_pad != N else x
    x_in = x_in.reshape(r_pad, Cf)
    grid = (r_pad // rt,)

    # Last block dim equals the full array dim (Cf), so no (8,128)
    # divisibility issue; when C divides 128 it is also an exact multiple
    # of 128 => unmasked, lane-dense stores.
    row_spec = pl.BlockSpec((rt, Cf), lambda i: (i, 0))
    par_spec = pl.BlockSpec((2, Cf), lambda i: (0, 0))

    y = pl.pallas_call(
        _mbn_fwd_kernel,
        out_shape=jax.ShapeDtypeStruct((r_pad, Cf), x.dtype),
        grid_spec=pltpu.PrefetchScalarGridSpec(
            num_scalar_prefetch=0,
            grid=grid,
            in_specs=[row_spec, par_spec],
            out_specs=row_spec,
        ),
        compiler_params=pltpu.CompilerParams(
            dimension_semantics=("parallel",),
            vmem_limit_bytes=vmem_limit_bytes),
    )(x_in, scale_shift)

    y = y.reshape(n_pad, C)
    if n_pad != N:
        y = y[:N]

    if logpx is None:
        return y
    log_out = (logpx.astype(jnp.float32) - ldg_sum).astype(logpx.dtype)
    return y, log_out


def _reference_forward(x, logpx, running_mean, running_var, weight, bias,
                       eps=EPS, affine=True):
    inv_std = jnp.exp(-0.5 * jnp.log(running_var + eps))
    y = (x - running_mean[None, :]) * inv_std[None, :]
    ldg = -0.5 * jnp.log(running_var + eps)
    if affine:
        y = y * jnp.exp(weight)[None, :] + bias[None, :]
        ldg = ldg + weight
    log_out = logpx - jnp.sum(ldg)
    return y, log_out


if __name__ == "__main__":
    key = jax.random.PRNGKey(0)
    N, C = 16, 8  # batch=16, num_features=8

    k1, k2, k3, k4, k5, k6 = jax.random.split(key, 6)
    x = jax.random.normal(k1, (N, C), dtype=jnp.float32)
    logpx = jax.random.normal(k2, (N, 1), dtype=jnp.float32)

    # Deterministic non-trivial params/buffers (reset_parameters would make
    # the transform identity-like, so perturb to exercise the kernel math).
    running_mean = 0.1 * jax.random.normal(k3, (C,), dtype=jnp.float32)
    running_var = 1.0 + 0.05 * jax.random.uniform(k4, (C,), dtype=jnp.float32)
    weight = 0.1 * jax.random.normal(k5, (C,), dtype=jnp.float32)
    bias = 0.1 * jax.random.normal(k6, (C,), dtype=jnp.float32)

    y, log_out = moving_batch_norm_forward(
        x, logpx, running_mean, running_var, weight, bias)
    jax.block_until_ready((y, log_out))

    y_ref, lo_ref = _reference_forward(
        x, logpx, running_mean, running_var, weight, bias)

    assert y.shape == (N, C) and log_out.shape == (N, 1)
    assert jnp.allclose(y, y_ref, atol=1e-5, rtol=1e-5)
    assert jnp.allclose(log_out, lo_ref, atol=1e-5, rtol=1e-5)

    # Ragged batch size (exercises the pad + slice remainder path).
    y2, lo2 = moving_batch_norm_forward(
        x[:13], logpx[:13], running_mean, running_var, weight, bias)
    jax.block_until_ready((y2, lo2))
    assert jnp.allclose(y2, y_ref[:13], atol=1e-5, rtol=1e-5)
    assert jnp.allclose(lo2, lo_ref[:13], atol=1e-5, rtol=1e-5)

    # Larger batch (exercises lane packing + multiple grid steps).
    kx = jax.random.PRNGKey(1)
    x3 = jax.random.normal(kx, (300, C), dtype=jnp.float32)
    lp3 = jnp.zeros((300, 1), dtype=jnp.float32)
    y3, lo3 = moving_batch_norm_forward(
        x3, lp3, running_mean, running_var, weight, bias)
    jax.block_until_ready((y3, lo3))
    y3_ref, lo3_ref = _reference_forward(
        x3, lp3, running_mean, running_var, weight, bias)
    assert jnp.allclose(y3, y3_ref, atol=1e-5, rtol=1e-5)
    assert jnp.allclose(lo3, lo3_ref, atol=1e-5, rtol=1e-5)

    # affine=False path.
    y4 = moving_batch_norm_forward(
        x, None, running_mean, running_var, affine=False)
    jax.block_until_ready(y4)
    y4_ref, _ = _reference_forward(
        x, logpx, running_mean, running_var, weight, bias, affine=False)
    assert jnp.allclose(y4, y4_ref, atol=1e-5, rtol=1e-5)

    print("KERNEL_OK")
</pallas_src>

<mosaic_0001>
module attributes {stable_mosaic.version = 11 : i64} {
  func.func @_mbn_fwd_kernel(%arg0: i32, %arg1: memref<8x128xf32, #tpu.memory_space<vmem>>, %arg2: memref<2x128xf32, #tpu.memory_space<vmem>>, %arg3: memref<8x128xf32, #tpu.memory_space<vmem>>) attributes {dimension_semantics = [#tpu.dimension_semantics<parallel>], iteration_bounds = array<i64: 1>, scalar_prefetch = 0 : i64, scratch_operands = 0 : i64, tpu.core_type = #tpu.core_type<tc>, window_params = [{transform_indices = @transform_0, window_bounds = array<i64: 8, 128>}, {pipeline_mode = #tpu.pipeline_mode<synchronous>, transform_indices = @transform_1, window_bounds = array<i64: 2, 128>}, {transform_indices = @transform_2, window_bounds = array<i64: 8, 128>}]} {
    %c0 = arith.constant 0 : index
    %c0_0 = arith.constant 0 : index
    %0 = vector.load %arg2[%c0, %c0_0] : memref<2x128xf32, #tpu.memory_space<vmem>>, vector<1x128xf32>
    %c1 = arith.constant 1 : index
    %c0_1 = arith.constant 0 : index
    %1 = vector.load %arg2[%c1, %c0_1] : memref<2x128xf32, #tpu.memory_space<vmem>>, vector<1x128xf32>
    %c0_2 = arith.constant 0 : index
    %c0_3 = arith.constant 0 : index
    %2 = vector.load %arg1[%c0_2, %c0_3] : memref<8x128xf32, #tpu.memory_space<vmem>>, vector<8x128xf32>
    %3 = vector.broadcast %0 : vector<1x128xf32> to vector<8x128xf32>
    %4 = arith.mulf %2, %3 : vector<8x128xf32>
    %5 = vector.broadcast %1 : vector<1x128xf32> to vector<8x128xf32>
    %6 = arith.addf %4, %5 : vector<8x128xf32>
    %c0_4 = arith.constant 0 : index
    %c0_5 = arith.constant 0 : index
    %7 = vector.load %arg3[%c0_4, %c0_5] : memref<8x128xf32, #tpu.memory_space<vmem>>, vector<8x128xf32>
    tpu.vector_store %arg3[%c0_4, %c0_5], %6 {strides = array<i32>} : memref<8x128xf32, #tpu.memory_space<vmem>>, vector<8x128xf32>,
    return
  }
  func.func @transform_0(%arg0: i32) -> (i32, i32) {
    %c0_i32 = arith.constant 0 : i32
    %c0_i32_0 = arith.constant 0 : i32
    return %arg0, %c0_i32 : i32, i32
  }
  func.func @transform_1(%arg0: i32) -> (i32, i32) {
    %c0_i32 = arith.constant 0 : i32
    %c0_i32_0 = arith.constant 0 : i32
    %c0_i32_1 = arith.constant 0 : i32
    return %c0_i32, %c0_i32_0 : i32, i32
  }
  func.func @transform_2(%arg0: i32) -> (i32, i32) {
    %c0_i32 = arith.constant 0 : i32
    %c0_i32_0 = arith.constant 0 : i32
    return %arg0, %c0_i32 : i32, i32
  }
}

</mosaic_0001>

<bundles_post_ra>
// kernel: tpu_custom_call.1
= control target key start
LH: loop header
LB: loop body
LE: loop exit
PB: predicated region body
PF: predicated region fallthrough
CT: control target
= control target key end

     0   :  { %7 = vsyncpa [#allocation3], 0  ;;  %s176_s0 = inlined_call_operand.hbm [shape: f32[8,128], index: 0, kind: input, shape index: {}]   ;;  %s177_s1 = inlined_call_operand.hbm [shape: f32[2,128], index: 1, kind: input, shape index: {}]   ;;  %s178_s2 = inlined_call_operand.hbm [shape: f32[8,128], index: 2, kind: output, shape index: {}]  }
   0x1   :  { %8 = vsyncpa [#allocation6], 0 }
   0x2   :  { %9 = vsyncpa [#allocation4], 0  ;;  %s15_s11 = sshll.u32 %s176_s0, 4  ;;  %s149_s12 = smov [#allocation2]   ;;  %s16_s11 = int_to_ptr.hbm [resolvable:$true] %s15_s11 }
   0x3   :  { %s17_s13 = sshll.u32 %s149_s12, 4  ;;  %s26_s16 = sshll.u32 %s177_s1, 4  ;;  %s18_s13 = int_to_ptr.vmem [resolvable:$true] %s17_s13  ;;  %s27_s16 = int_to_ptr.hbm [resolvable:$true] %s26_s16 }
   0x4   :  { %20 = dma.hbm_to_vmem [thread:$0]  %s16_s11, 128, %s18_s13, [#allocation3]  }
   0x5   :  { %s150_s17 = smov [#allocation5]  }
   0x6   :  { %s28_s18 = sshll.u32 %s150_s17, 4  ;;  %s29_s18 = int_to_ptr.vmem [resolvable:$true] %s28_s18 }
   0x7   :  { %31 = dma.hbm_to_vmem [thread:$0]  %s27_s16, 32, %s29_s18, [#allocation6]  }
   0x8   :  { %143 = dma.done.wait [#allocation3], 128  }
   0x9   :  { %144 = vsyncadd [#allocation3], 4294967168 }
   0xa   :  { %145 = dma.done.wait [#allocation6], 32  }
   0xb   :  { %146 = vsyncadd [#allocation6], 4294967264  ;;  %v42_v0 = vld [vmem:[#allocation2] sm:$0xff]  ;;  %v69_v1 = vld [vmem:[#allocation5] ss:$0 sm:$0xff]  ;;  %s151_s0 = smov [#allocation7]  }
   0xc   :  { %v70_v2 = vld [vmem:[#allocation5 + $0x1] ss:$0 sm:$0xff]  ;;  %s53_s19 = sshll.u32 %s151_s0, 4  ;;  %s55_s22 = sshll.u32 %s178_s2, 4  ;;  %v44_v3 = vmul.f32 %v69_v1, %v42_v0  ;;  %s54_s19 = int_to_ptr.vmem [resolvable:$true] %s53_s19  ;;  %s56_s22 = int_to_ptr.hbm [resolvable:$true] %s55_s22 }
   0xe   :  { %v46_v4 = vadd.f32 %v70_v2, %v44_v3 }
  0x10   :  { %47 = vst [vmem:[#allocation7] sm:$0xff] %v46_v4 }
  0x11   :  { %58 = dma.vmem_to_hbm [thread:$0]  %s54_s19, 128, %s56_s22, [#allocation4]  }
  0x12   :  { %147 = dma.done.wait [#allocation4], 128  }
  0x13   :  { %148 = vsyncadd [#allocation4], 4294967168 }
  0x14   :  { %63 = vsyncpa [#allocation3], 1 }
  0x15   :  { %64 = vsyncpa [#allocation6], 1 }
  0x16   :  { %65 = vsyncpa [#allocation4], 1 }

</bundles_post_ra>
